<compile_context>
chip_gen: v7x
topology: tpu7x:2x2x1
jax: 0.10.0
libtpu: 0.0.40
codegen_flags: <defaults>
</compile_context>

<pallas_src>
import jax
import jax.numpy as jnp
from jax.experimental import pallas as pl
from jax.experimental.pallas import tpu as pltpu


# Conservative across v5e/v6e/v7x (v7x: 64 MiB physical, 32 MiB default scoped VMEM).
_VMEM_TILE_BUDGET_BYTES = 12 * 1024 * 1024


def _se_kernel(x_ref, w1e_ref, w2e_ref, o_ref):
    # x_ref/o_ref : (b_blk, C*L) lane-dense slabs, source dtype
    # w1e_ref     : (C*L, H)  pooling folded into first Linear weight
    # w2e_ref     : (H, C*L)  over-L broadcast folded into second Linear weight
    x = x_ref[...]

    # Squeeze + FC1 in one MXU matmul (f32 accumulation, native-dtype operands).
    h = jnp.dot(x, w1e_ref[...], preferred_element_type=jnp.float32)   # (b, H)
    h = jnp.maximum(h, 0.0)

    # FC2 + sigmoid + broadcast-over-L in one MXU matmul; sigmoid runs on the
    # EUP (free bundle slot) over the lane-dense (b, C*L) gate.
    gate = jax.nn.sigmoid(
        jnp.dot(h, w2e_ref[...], preferred_element_type=jnp.float32))  # (b, C*L)

    # Rescale in the source dtype (no full-tile f32 upcast for bf16 inputs).
    o_ref[...] = (x * gate.astype(x.dtype)).astype(o_ref.dtype)


def make_se_params(w1, w2, L):
    """One-time fold of the length-mean and over-L broadcast into the FC weights.

    w1: (H, C) first Linear weight (out_features x in_features), no bias
    w2: (C, H) second Linear weight, no bias
    Returns (w1_eff (C*L, H), w2_eff (H, C*L)), both f32.
    """
    # mean_L(x) @ w1.T  ==  x_flat @ W1_eff   with W1_eff[(c*L+l), h] = w1[h, c] / L
    w1_eff = jnp.repeat(w1.astype(jnp.float32).T, L, axis=0) / jnp.float32(L)
    # broadcast_L(sigmoid(h @ w2.T)) == sigmoid(h @ W2_eff), W2_eff[h, (c*L+l)] = w2[c, h]
    w2_eff = jnp.repeat(w2.astype(jnp.float32).T, L, axis=1)
    return w1_eff, w2_eff


def _pick_b_blk(B, CL, elem_bytes):
    # 2 input + 2 output double-buffered (b_blk, C*L) slabs dominate VMEM use.
    per_row = 4 * CL * elem_bytes
    if B * per_row <= _VMEM_TILE_BUDGET_BYTES:
        return int(B)
    b = (_VMEM_TILE_BUDGET_BYTES // per_row) // 8 * 8  # full-sublane tiles
    return int(max(8, min(b, B)))


def se_blk(x, w1_eff, w2_eff):
    """SEBlk forward with pre-folded weights (see make_se_params).

    x: (B, C, L) float32 or bfloat16, NCL layout.
    """
    B, C, L = x.shape
    CL = C * L
    H = w1_eff.shape[1]
    assert w1_eff.shape == (CL, H) and w2_eff.shape == (H, CL)

    # Keep bf16 inputs on the native bf16 MXU path (exact here: 1/L is a power
    # of two; for non-power-of-two L keep the folded weights in f32 instead).
    w1e = w1_eff.astype(x.dtype)
    w2e = w2_eff.astype(x.dtype)

    # Lane-dense view: (C, L) row-major flatten -> C*L (multiple of 128 here).
    x_flat = x.reshape(B, CL)

    elem_bytes = jnp.dtype(x.dtype).itemsize
    w_bytes = jnp.dtype(w1e.dtype).itemsize

    b_blk = _pick_b_blk(B, CL, elem_bytes)
    grid = (pl.cdiv(B, b_blk),)

    cost = pl.CostEstimate(
        flops=int(4 * B * CL * H          # two folded FC matmuls
                  + B * CL),              # elementwise rescale
        transcendentals=int(B * CL),      # sigmoid on the expanded gate
        bytes_accessed=int(2 * B * CL * elem_bytes + 2 * CL * H * w_bytes),
    )

    # VMEM: double-buffered x/out slabs + double-buffered (tiny) weights.
    need = 4 * b_blk * CL * elem_bytes + 4 * CL * H * w_bytes
    compiler_params = pltpu.CompilerParams(
        # Batch axis is embarrassingly parallel -> shards across both TCs on v7x.
        dimension_semantics=("parallel",),
        vmem_limit_bytes=int(max(2 * need, 16 * 1024 * 1024)),
    )

    out_flat = pl.pallas_call(
        _se_kernel,
        out_shape=jax.ShapeDtypeStruct((B, CL), x.dtype),
        grid_spec=pltpu.PrefetchScalarGridSpec(
            num_scalar_prefetch=0,
            grid=grid,
            in_specs=[
                pl.BlockSpec((b_blk, CL), lambda i: (i, 0)),   # x slab
                pl.BlockSpec((CL, H), lambda i: (0, 0)),       # folded W1
                pl.BlockSpec((H, CL), lambda i: (0, 0)),       # folded W2
            ],
            out_specs=pl.BlockSpec((b_blk, CL), lambda i: (i, 0)),
        ),
        compiler_params=compiler_params,
        cost_estimate=cost,
    )(x_flat, w1e, w2e)

    return out_flat.reshape(B, C, L)


def se_blk_from_weights(x, w1, w2):
    """Convenience wrapper: fold weights then run (prefer pre-folding under jit)."""
    w1_eff, w2_eff = make_se_params(w1, w2, x.shape[-1])
    return se_blk(x, w1_eff, w2_eff)


def se_blk_ref(x, w1, w2):
    """Pure-JAX reference matching the PyTorch module."""
    y = jnp.mean(x, axis=-1)                     # (B, C)
    y = jnp.maximum(y @ w1.T, 0.0)               # (B, H)
    y = jax.nn.sigmoid(y @ w2.T)                 # (B, C)
    return x * y[:, :, None]


if __name__ == "__main__":
    # Small shapes consistent with the module: batch=2, ch_in=48, reduction=12, L=16.
    B, C, L = 2, 48, 16
    reduction = 12
    H = C // reduction  # 4

    key = jax.random.PRNGKey(0)
    kx, k1, k2 = jax.random.split(key, 3)
    x = jax.random.normal(kx, (B, C, L), dtype=jnp.float32)
    # Deterministic synthetic weights (shapes match nn.Linear(C, H) / nn.Linear(H, C)).
    w1 = jax.random.normal(k1, (H, C), dtype=jnp.float32) * 0.1
    w2 = jax.random.normal(k2, (C, H), dtype=jnp.float32) * 0.1

    # One-time precompute of the folded weights; kernel call is jitted.
    w1_eff, w2_eff = make_se_params(w1, w2, L)
    se = jax.jit(se_blk)

    out = jax.block_until_ready(se(x, w1_eff, w2_eff))
    ref = jax.block_until_ready(se_blk_ref(x, w1, w2))

    assert out.shape == (B, C, L)
    max_err = float(jnp.max(jnp.abs(out - ref)))
    assert jnp.allclose(out, ref, atol=1e-3, rtol=1e-3), max_err
    print("KERNEL_OK")
</pallas_src>

<mosaic_0001>
module attributes {stable_mosaic.version = 11 : i64} {
  func.func @_se_kernel(%arg0: i32, %arg1: memref<2x768xf32, #tpu.memory_space<vmem>>, %arg2: memref<768x4xf32, #tpu.memory_space<vmem>>, %arg3: memref<4x768xf32, #tpu.memory_space<vmem>>, %arg4: memref<2x768xf32, #tpu.memory_space<vmem>>) attributes {dimension_semantics = [#tpu.dimension_semantics<parallel>], iteration_bounds = array<i64: 1>, scalar_prefetch = 0 : i64, scratch_operands = 0 : i64, tpu.core_type = #tpu.core_type<tc>, window_params = [{transform_indices = @transform_0, window_bounds = array<i64: 2, 768>}, {pipeline_mode = #tpu.pipeline_mode<synchronous>, transform_indices = @transform_1, window_bounds = array<i64: 768, 4>}, {pipeline_mode = #tpu.pipeline_mode<synchronous>, transform_indices = @transform_2, window_bounds = array<i64: 4, 768>}, {transform_indices = @transform_3, window_bounds = array<i64: 2, 768>}]} {
    %c0 = arith.constant 0 : index
    %c0_0 = arith.constant 0 : index
    %0 = vector.load %arg1[%c0, %c0_0] : memref<2x768xf32, #tpu.memory_space<vmem>>, vector<2x768xf32>
    %c0_1 = arith.constant 0 : index
    %c0_2 = arith.constant 0 : index
    %1 = vector.load %arg2[%c0_1, %c0_2] : memref<768x4xf32, #tpu.memory_space<vmem>>, vector<768x4xf32>
    %cst = arith.constant dense<0.000000e+00> : vector<2x4xf32>
    %2 = tpu.matmul %0, %1, %cst {dimension_numbers = #tpu.dot_dimension_numbers<[1], [0], [0], [1], [0, 0, 1, 1], [], []>} : vector<2x768xf32>, vector<768x4xf32>, vector<2x4xf32> -> vector<2x4xf32>
    %cst_3 = arith.constant 0.000000e+00 : f32
    %3 = vector.broadcast %cst_3 : f32 to vector<2x4xf32>
    %4 = arith.maximumf %2, %3 : vector<2x4xf32>
    %c0_4 = arith.constant 0 : index
    %c0_5 = arith.constant 0 : index
    %5 = vector.load %arg3[%c0_4, %c0_5] : memref<4x768xf32, #tpu.memory_space<vmem>>, vector<4x768xf32>
    %cst_6 = arith.constant dense<0.000000e+00> : vector<2x768xf32>
    %6 = tpu.matmul %4, %5, %cst_6 {dimension_numbers = #tpu.dot_dimension_numbers<[1], [0], [0], [1], [0, 0, 1, 1], [], []>} : vector<2x4xf32>, vector<4x768xf32>, vector<2x768xf32> -> vector<2x768xf32>
    %7 = arith.negf %6 : vector<2x768xf32>
    %8 = math.exp %7 : vector<2x768xf32>
    %cst_7 = arith.constant 1.000000e+00 : f32
    %9 = vector.broadcast %cst_7 : f32 to vector<2x768xf32>
    %10 = arith.addf %9, %8 : vector<2x768xf32>
    %11 = arith.divf %9, %10 : vector<2x768xf32>
    %12 = arith.mulf %0, %11 : vector<2x768xf32>
    %c0_8 = arith.constant 0 : index
    %c0_9 = arith.constant 0 : index
    %13 = vector.load %arg4[%c0_8, %c0_9] : memref<2x768xf32, #tpu.memory_space<vmem>>, vector<2x768xf32>
    tpu.vector_store %arg4[%c0_8, %c0_9], %12 {strides = array<i32>} : memref<2x768xf32, #tpu.memory_space<vmem>>, vector<2x768xf32>,
    return
  }
  func.func @transform_0(%arg0: i32) -> (i32, i32) {
    %c0_i32 = arith.constant 0 : i32
    %c0_i32_0 = arith.constant 0 : i32
    return %arg0, %c0_i32 : i32, i32
  }
  func.func @transform_1(%arg0: i32) -> (i32, i32) {
    %c0_i32 = arith.constant 0 : i32
    %c0_i32_0 = arith.constant 0 : i32
    %c0_i32_1 = arith.constant 0 : i32
    return %c0_i32, %c0_i32_0 : i32, i32
  }
  func.func @transform_2(%arg0: i32) -> (i32, i32) {
    %c0_i32 = arith.constant 0 : i32
    %c0_i32_0 = arith.constant 0 : i32
    %c0_i32_1 = arith.constant 0 : i32
    return %c0_i32, %c0_i32_0 : i32, i32
  }
  func.func @transform_3(%arg0: i32) -> (i32, i32) {
    %c0_i32 = arith.constant 0 : i32
    %c0_i32_0 = arith.constant 0 : i32
    return %arg0, %c0_i32 : i32, i32
  }
}

</mosaic_0001>

<bundles_post_ra>
// kernel: se_blk.1
= control target key start
LH: loop header
LB: loop body
LE: loop exit
PB: predicated region body
PF: predicated region fallthrough
CT: control target
= control target key end

     0   :  { %v918_v47 = vmov 1983009808   ;;  %v118_v49 = vlaneseq  ;;  %vm369_vm0 = vcmask 1043456   ;;  %vm365_vm1 = vcmask 31744   ;;  %s1278_s1 = inlined_call_operand.vmem [shape: f32[768,4], index: 1, kind: input, shape index: {}]   ;;  %s1279_s0 = inlined_call_operand.vmem [shape: f32[2,768], index: 0, kind: input, shape index: {}]   ;;  %s1280_s2 = inlined_call_operand.vmem [shape: f32[4,768], index: 2, kind: input, shape index: {}]   ;;  %s1281_s3 = inlined_call_operand.vmem [shape: f32[2,768], index: 3, kind: output, shape index: {}]  }
   0x1   :  { %v32_v0 = vld [vmem:[%s1278_s1 + $0x80] sm:$0xff]  ;;  %v33_v1 = vld [vmem:[%s1278_s1 + $0x88] sm:$0xff]  ;;  %v34_v11 = vld [vmem:[%s1278_s1 + $0x90] sm:$0xff]  ;;  %v116_v48 = vunpack.c.l.s4 %v918_v47 }
   0x2   :  { %v64_v2 = vld [vmem:[%s1278_s1 + $0x180] sm:$0xff]  ;;  %v792_v3 = vpack.c.bf16 %v33_v1, %v32_v0  ;;  %v65_v4 = vld [vmem:[%s1278_s1 + $0x188] sm:$0xff]  ;;  %v35_v13 = vld [vmem:[%s1278_s1 + $0x98] sm:$0xff]  ;;  %v119_v0 = vshrl.u32 %v118_v49, 7 }
   0x3   :  { %v16_v5 = vld [vmem:[%s1278_s1] sm:$0xff]  ;;  %v17_v6 = vld [vmem:[%s1278_s1 + $0x8] sm:$0xff]  ;;  %v824_v7 = vpack.c.bf16 %v65_v4, %v64_v2  ;;  %v66_v14 = vld [vmem:[%s1278_s1 + $0x190] sm:$0xff]  ;;  %v796_v16 = vpack.c.bf16 %v35_v13, %v34_v11  ;;  %v117_v63 = vunpack.c.0.s8 %v116_v48 }
   0x4   :  { %v794_v8 = vpack.c.bf16 %v17_v6, %v16_v5  ;;  %v48_v9 = vld [vmem:[%s1278_s1 + $0x100] sm:$0xff]  ;;  %v49_v10 = vld [vmem:[%s1278_s1 + $0x108] sm:$0xff]  ;;  %793 = vmatprep.subr.bf16.mxu0 %v792_v3  ;;  %v67_v15 = vld [vmem:[%s1278_s1 + $0x198] sm:$0xff] }
   0x5   :  { %v826_v12 = vpack.c.bf16 %v49_v10, %v48_v9  ;;  %825 = vmatprep.subr.bf16.mxu1 %v824_v7  ;;  %v828_v17 = vpack.c.bf16 %v67_v15, %v66_v14  ;;  %v18_v18 = vld [vmem:[%s1278_s1 + $0x10] sm:$0xff]  ;;  %v19_v19 = vld [vmem:[%s1278_s1 + $0x18] sm:$0xff]  ;;  %v36_v23 = vld [vmem:[%s1278_s1 + $0xa0] sm:$0xff]  ;;  %v1090_v13 = vsub.s32 %v117_v63, %v119_v0 }
   0x6   :  { %795 = vmatpush3.bf16.msra.mxu0 %v794_v8  ;;  %v50_v20 = vld [vmem:[%s1278_s1 + $0x110] sm:$0xff]  ;;  %v798_v21 = vpack.c.bf16 %v19_v19, %v18_v18  ;;  %v51_v22 = vld [vmem:[%s1278_s1 + $0x118] sm:$0xff]  ;;  %v37_v24 = vld [vmem:[%s1278_s1 + $0xa8] sm:$0xff] }
   0x7   :  { %827 = vmatpush3.bf16.msra.mxu1 %v826_v12  ;;  %797 = vmatprep.subr.bf16.mxu0 %v796_v16  ;;  %v830_v25 = vpack.c.bf16 %v51_v22, %v50_v20  ;;  %v800_v26 = vpack.c.bf16 %v37_v24, %v36_v23  ;;  %v68_v27 = vld [vmem:[%s1278_s1 + $0x1a0] sm:$0xff]  ;;  %v69_v28 = vld [vmem:[%s1278_s1 + $0x1a8] sm:$0xff]  ;;  %v38_v35 = vld [vmem:[%s1278_s1 + $0xb0] sm:$0xff] }
   0x8   :  { %829 = vmatprep.subr.bf16.mxu1 %v828_v17  ;;  %v20_v29 = vld [vmem:[%s1278_s1 + $0x20] sm:$0xff]  ;;  %v832_v30 = vpack.c.bf16 %v69_v28, %v68_v27  ;;  %v21_v31 = vld [vmem:[%s1278_s1 + $0x28] sm:$0xff]  ;;  %v39_v36 = vld [vmem:[%s1278_s1 + $0xb8] sm:$0xff] }
   0x9   :  { %v52_v32 = vld [vmem:[%s1278_s1 + $0x120] sm:$0xff]  ;;  %v53_v33 = vld [vmem:[%s1278_s1 + $0x128] sm:$0xff]  ;;  %v802_v34 = vpack.c.bf16 %v21_v31, %v20_v29  ;;  %v70_v37 = vld [vmem:[%s1278_s1 + $0x1b0] sm:$0xff]  ;;  %v804_v39 = vpack.c.bf16 %v39_v36, %v38_v35 }
   0xa   :  { %799 = vmatpush3.bf16.msra.mxu0 %v798_v21  ;;  %v834_v38 = vpack.c.bf16 %v53_v33, %v52_v32  ;;  %v71_v40 = vld [vmem:[%s1278_s1 + $0x1b8] sm:$0xff]  ;;  %v22_v41 = vld [vmem:[%s1278_s1 + $0x30] sm:$0xff]  ;;  %v40_v46 = vld [vmem:[%s1278_s1 + $0xc0] sm:$0xff] }
   0xb   :  { %831 = vmatpush3.bf16.msra.mxu1 %v830_v25  ;;  %801 = vmatprep.subr.bf16.mxu0 %v800_v26  ;;  %v23_v42 = vld [vmem:[%s1278_s1 + $0x38] sm:$0xff]  ;;  %v836_v43 = vpack.c.bf16 %v71_v40, %v70_v37  ;;  %v54_v44 = vld [vmem:[%s1278_s1 + $0x130] sm:$0xff]  ;;  %v41_v50 = vld [vmem:[%s1278_s1 + $0xc8] sm:$0xff] }
   0xc   :  { %833 = vmatprep.subr.bf16.mxu1 %v832_v30  ;;  %v55_v45 = vld [vmem:[%s1278_s1 + $0x138] sm:$0xff]  ;;  %v72_v51 = vld [vmem:[%s1278_s1 + $0x1c0] sm:$0xff]  ;;  %v73_v52 = vld [vmem:[%s1278_s1 + $0x1c8] sm:$0xff]  ;;  %v806_v53 = vpack.c.bf16 %v23_v42, %v22_v41  ;;  %v808_v55 = vpack.c.bf16 %v41_v50, %v40_v46 }
   0xd   :  { %v838_v54 = vpack.c.bf16 %v55_v45, %v54_v44  ;;  %v24_v56 = vld [vmem:[%s1278_s1 + $0x40] sm:$0xff]  ;;  %v25_v57 = vld [vmem:[%s1278_s1 + $0x48] sm:$0xff]  ;;  %v840_v59 = vpack.c.bf16 %v73_v52, %v72_v51  ;;  %v42_v61 = vld [vmem:[%s1278_s1 + $0xd0] sm:$0xff] }
   0xe   :  { %803 = vmatpush3.bf16.msra.mxu0 %v802_v34  ;;  %v56_v58 = vld [vmem:[%s1278_s1 + $0x140] sm:$0xff]  ;;  %v57_v60 = vld [vmem:[%s1278_s1 + $0x148] sm:$0xff]  ;;  %v43_v62 = vld [vmem:[%s1278_s1 + $0xd8] sm:$0xff]  ;;  %v810_v3 = vpack.c.bf16 %v25_v57, %v24_v56 }
   0xf   :  { %835 = vmatpush3.bf16.msra.mxu1 %v834_v38  ;;  %805 = vmatprep.subr.bf16.mxu0 %v804_v39  ;;  %v74_v1 = vld [vmem:[%s1278_s1 + $0x1d0] sm:$0xff]  ;;  %v75_v2 = vld [vmem:[%s1278_s1 + $0x1d8] sm:$0xff]  ;;  %v842_v4 = vpack.c.bf16 %v57_v60, %v56_v58  ;;  %v812_v5 = vpack.c.bf16 %v43_v62, %v42_v61  ;;  %v44_v11 = vld [vmem:[%s1278_s1 + $0xe0] sm:$0xff] }
  0x10   :  { %837 = vmatprep.subr.bf16.mxu1 %v836_v43  ;;  %v26_v6 = vld [vmem:[%s1278_s1 + $0x50] sm:$0xff]  ;;  %v27_v7 = vld [vmem:[%s1278_s1 + $0x58] sm:$0xff]  ;;  %v844_v9 = vpack.c.bf16 %v75_v2, %v74_v1  ;;  %v45_v12 = vld [vmem:[%s1278_s1 + $0xe8] sm:$0xff] }
  0x11   :  { %v58_v8 = vld [vmem:[%s1278_s1 + $0x150] sm:$0xff]  ;;  %v59_v10 = vld [vmem:[%s1278_s1 + $0x158] sm:$0xff]  ;;  %v76_v14 = vld [vmem:[%s1278_s1 + $0x1e0] sm:$0xff]  ;;  %v814_v16 = vpack.c.bf16 %v27_v7, %v26_v6  ;;  %v816_v19 = vpack.c.bf16 %v45_v12, %v44_v11 }
  0x12   :  { %807 = vmatpush3.bf16.msra.mxu0 %v806_v53  ;;  %v77_v15 = vld [vmem:[%s1278_s1 + $0x1e8] sm:$0xff]  ;;  %v28_v17 = vld [vmem:[%s1278_s1 + $0x60] sm:$0xff]  ;;  %v846_v18 = vpack.c.bf16 %v59_v10, %v58_v8  ;;  %v46_v25 = vld [vmem:[%s1278_s1 + $0xf0] sm:$0xff] }
  0x13   :  { %839 = vmatpush3.bf16.msra.mxu1 %v838_v54  ;;  %809 = vmatprep.subr.bf16.mxu0 %v808_v55  ;;  %v29_v20 = vld [vmem:[%s1278_s1 + $0x68] sm:$0xff]  ;;  %v60_v21 = vld [vmem:[%s1278_s1 + $0x160] sm:$0xff]  ;;  %v848_v23 = vpack.c.bf16 %v77_v15, %v76_v14  ;;  %v47_v26 = vld [vmem:[%s1278_s1 + $0xf8] sm:$0xff] }
  0x14   :  { %841 = vmatprep.subr.bf16.mxu1 %v840_v59  ;;  %v1110_v22 = vld [vmem:[%s1279_s0] sm:$0xff]  ;;  %v61_v24 = vld [vmem:[%s1278_s1 + $0x168] sm:$0xff]  ;;  %v78_v29 = vld [vmem:[%s1278_s1 + $0x1f0] sm:$0xff]  ;;  %v818_v31 = vpack.c.bf16 %v29_v20, %v28_v17  ;;  %v820_v36 = vpack.c.bf16 %v47_v26, %v46_v25 }
  0x15   :  { %v121_v27 = vrot.slane %v1110_v22, %v1090_v13  ;;  %v114_v28 = vcombine.high %v1110_v22, %v1110_v22  ;;  %v79_v30 = vld [vmem:[%s1278_s1 + $0x1f8] sm:$0xff]  ;;  %v30_v32 = vld [vmem:[%s1278_s1 + $0x70] sm:$0xff]  ;;  %v850_v35 = vpack.c.bf16 %v61_v24, %v60_v21  ;;  %v1147_v41 = vld [vmem:[%s1279_s0 + $0x8] sm:$0xf] }
  0x16   :  { %811 = vmatpush3.bf16.msra.mxu0 %v810_v3  ;;  %v31_v37 = vld [vmem:[%s1278_s1 + $0x78] sm:$0xff]  ;;  %v62_v38 = vld [vmem:[%s1278_s1 + $0x170] sm:$0xff]  ;;  %v852_v40 = vpack.c.bf16 %v79_v30, %v78_v29  ;;  %v96_v43 = vld [vmem:[%s1278_s1 + $0x280] sm:$0xff]  ;;  %v1163_v50 = vrot.slane %v1147_v41, %v1090_v13 }
  0x17   :  { %843 = vmatpush3.bf16.msra.mxu1 %v842_v4  ;;  %813 = vmatprep.subr.bf16.mxu0 %v812_v5  ;;  %v129_v33 = vcombine.high %v121_v27, %v121_v27  ;;  %v128_v34 = vrot.slane %v114_v28, %v1090_v13  ;;  %v63_v39 = vld [vmem:[%s1278_s1 + $0x178] sm:$0xff]  ;;  %v97_v44 = vld [vmem:[%s1278_s1 + $0x288] sm:$0xff]  ;;  %v822_v45 = vpack.c.bf16 %v31_v37, %v30_v32  ;;  %v80_v48 = vld [vmem:[%s1278_s1 + $0x200] sm:$0xff] }
  0x18   :  { %845 = vmatprep.subr.bf16.mxu1 %v844_v9  ;;  %v854_v46 = vpack.c.bf16 %v63_v39, %v62_v38  ;;  %v856_v47 = vpack.c.bf16 %v97_v44, %v96_v43  ;;  %v81_v49 = vld [vmem:[%s1278_s1 + $0x208] sm:$0xff]  ;;  %v98_v51 = vld [vmem:[%s1278_s1 + $0x290] sm:$0xff]  ;;  %v99_v52 = vld [vmem:[%s1278_s1 + $0x298] sm:$0xff]  ;;  %v138_v57 = vcombine.high %v1163_v50, %v1163_v50 }
  0x19   :  { %209 = vmatprep.mubr.f32.mxu0 %v129_v33  ;;  %v130_v42 = vcombine.high %v128_v34, %v128_v34  ;;  %v858_v53 = vpack.c.bf16 %v81_v49, %v80_v48  ;;  %v860_v54 = vpack.c.bf16 %v99_v52, %v98_v51  ;;  %v82_v55 = vld [vmem:[%s1278_s1 + $0x210] sm:$0xff]  ;;  %v83_v56 = vld [vmem:[%s1278_s1 + $0x218] sm:$0xff]  ;;  %v100_v58 = vld [vmem:[%s1278_s1 + $0x2a0] sm:$0xff] }
  0x1a   :  { %815 = vmatpush3.bf16.msra.mxu0 %v814_v16  ;;  %v101_v59 = vld [vmem:[%s1278_s1 + $0x2a8] sm:$0xff]  ;;  %v862_v60 = vpack.c.bf16 %v83_v56, %v82_v55  ;;  %v84_v62 = vld [vmem:[%s1278_s1 + $0x220] sm:$0xff]  ;;  %v102_v0 = vld [vmem:[%s1278_s1 + $0x2b0] sm:$0xff] }
  0x1b   :  { %847 = vmatpush3.bf16.msra.mxu1 %v846_v18  ;;  %817 = vmatprep.subr.bf16.mxu0 %v816_v19  ;;  %v864_v61 = vpack.c.bf16 %v101_v59, %v100_v58  ;;  %v85_v63 = vld [vmem:[%s1278_s1 + $0x228] sm:$0xff]  ;;  %v103_v1 = vld [vmem:[%s1278_s1 + $0x2b8] sm:$0xff]  ;;  %v86_v4 = vld [vmem:[%s1278_s1 + $0x230] sm:$0xff] }
  0x1c   :  { %849 = vmatprep.subr.bf16.mxu1 %v848_v23  ;;  %279 = vmatprep.mubr.f32.mxu1 %v130_v42  ;;  %v866_v2 = vpack.c.bf16 %v85_v63, %v84_v62  ;;  %v868_v3 = vpack.c.bf16 %v103_v1, %v102_v0  ;;  %v87_v5 = vld [vmem:[%s1278_s1 + $0x238] sm:$0xff]  ;;  %v104_v6 = vld [vmem:[%s1278_s1 + $0x2c0] sm:$0xff]  ;;  %v105_v7 = vld [vmem:[%s1278_s1 + $0x2c8] sm:$0xff] }
  0x1d   :  { %v870_v8 = vpack.c.bf16 %v87_v5, %v86_v4  ;;  %v872_v9 = vpack.c.bf16 %v105_v7, %v104_v6  ;;  %v88_v10 = vld [vmem:[%s1278_s1 + $0x240] sm:$0xff]  ;;  %v89_v11 = vld [vmem:[%s1278_s1 + $0x248] sm:$0xff]  ;;  %v106_v12 = vld [vmem:[%s1278_s1 + $0x2d0] sm:$0xff] }
  0x1e   :  { %819 = vmatpush3.bf16.msra.mxu0 %v818_v31  ;;  %v107_v14 = vld [vmem:[%s1278_s1 + $0x2d8] sm:$0xff]  ;;  %v874_v15 = vpack.c.bf16 %v89_v11, %v88_v10  ;;  %v90_v17 = vld [vmem:[%s1278_s1 + $0x250] sm:$0xff]  ;;  %v108_v19 = vld [vmem:[%s1278_s1 + $0x2e0] sm:$0xff] }
  0x1f   :  { %851 = vmatpush3.bf16.msra.mxu1 %v850_v35  ;;  %821 = vmatprep.subr.bf16.mxu0 %v820_v36  ;;  %v876_v16 = vpack.c.bf16 %v107_v14, %v106_v12  ;;  %v91_v18 = vld [vmem:[%s1278_s1 + $0x258] sm:$0xff]  ;;  %v109_v20 = vld [vmem:[%s1278_s1 + $0x2e8] sm:$0xff]  ;;  %v92_v24 = vld [vmem:[%s1278_s1 + $0x260] sm:$0xff]  ;;  %v919_v36 = vmov 0.0  }
  0x20   :  { %853 = vmatprep.subr.bf16.mxu1 %v852_v40  ;;  %v878_v21 = vpack.c.bf16 %v91_v18, %v90_v17  ;;  %v880_v23 = vpack.c.bf16 %v109_v20, %v108_v19  ;;  %v93_v25 = vld [vmem:[%s1278_s1 + $0x268] sm:$0xff]  ;;  %v110_v26 = vld [vmem:[%s1278_s1 + $0x2f0] sm:$0xff]  ;;  %v95_v31 = vld [vmem:[%s1278_s1 + $0x278] sm:$0xff] }
  0x21   :  { %v882_v28 = vpack.c.bf16 %v93_v25, %v92_v24  ;;  %v94_v30 = vld [vmem:[%s1278_s1 + $0x270] sm:$0xff]  ;;  %v356_v33 = vld [vmem:[%s1280_s2] sm:$0xff]  ;;  %v357_v35 = vld [vmem:[%s1280_s2 + $0x8] sm:$0xff] }
  0x22   :  { %823 = vmatpush3.bf16.msra.mxu0 %v822_v45  ;;  %v886_v32 = vpack.c.bf16 %v95_v31, %v94_v30  ;;  %v363_v37 = vcombine.high %v357_v35, %v357_v35  ;;  %v358_v49 = vld [vmem:[%s1280_s2 + $0x10] sm:$0xff] }
  0x23   :  { %855 = vmatpush3.bf16.msra.mxu1 %v854_v46  ;;  %857 = vmatprep.subr.bf16.mxu0 %v856_v47  ;;  %v364_v52 = vcombine.high %v358_v49, %v358_v49 }
  0x25   :  { %210 = vmatmul.mubr.f32.vlgmr.msra.gmra.mrb[0].mxu0 %v121_v27  ;;  %v111_v27 = vld [vmem:[%s1278_s1 + $0x2f8] sm:$0xff] }
  0x26   :  { %280 = vmatmul.mubr.f32.vlgmr.msra.gmra.mrb[0].mxu1 %v128_v34  ;;  %859 = vmatpush3.bf16.msra.mxu0 %v858_v53  ;;  %v884_v29 = vpack.c.bf16 %v111_v27, %v110_v26  ;;  %v362_v34 = vcombine.high %v356_v33, %v356_v33 }
  0x27   :  { %861 = vmatprep.subr.bf16.mxu0 %v860_v54  ;;  %349 = vmatprep.mubr.f32.mxu0 %v138_v57 }
  0x28   :  { %672 = vmatprep.subr.msk.mxu1 %vm369_vm0, %v362_v34  ;;  %446 = vmatprep.mubr.f32.mxu1 %v919_v36 }
  0x29   :  { %673 = vmatpush1.msk.msra.mxu1 %vm369_vm0, %v356_v33 }
  0x2a   :  { %863 = vmatpush3.bf16.msra.mxu0 %v862_v60  ;;  %675 = vmatprep.subr.msk.mxu1 %vm369_vm0, %v363_v37 }
  0x2b   :  { %865 = vmatprep.subr.bf16.mxu0 %v864_v61 }
  0x2e   :  { %867 = vmatpush3.bf16.msra.mxu0 %v866_v2 }
  0x2f   :  { %869 = vmatprep.subr.bf16.mxu0 %v868_v3 }
  0x32   :  { %871 = vmatpush3.bf16.msra.mxu0 %v870_v8 }
  0x33   :  { %873 = vmatprep.subr.bf16.mxu0 %v872_v9 }
  0x36   :  { %875 = vmatpush3.bf16.msra.mxu0 %v874_v15 }
  0x37   :  { %877 = vmatprep.subr.bf16.mxu0 %v876_v16 }
  0x3a   :  { %879 = vmatpush3.bf16.msra.mxu0 %v878_v21 }
  0x3b   :  { %881 = vmatprep.subr.bf16.mxu0 %v880_v23 }
  0x3e   :  { %883 = vmatpush3.bf16.msra.mxu0 %v882_v28 }
  0x3f   :  { %885 = vmatprep.subr.bf16.mxu0 %v884_v29 }
  0x42   :  { %887 = vmatpush3.bf16.msra.mxu0 %v886_v32 }
  0x45   :  { %350 = vmatmul.mubr.f32.vlgmr.msra.gmra.mrb[2].mxu0 %v1163_v50 }
  0xf8   :  { %v719_v38 = vpop.f32.mrb[0].mxu0 }
  0xf9   :  { %v754_v39 = vpop.f32.mrb[0].mxu1  ;;  %v720_v40 = vpop.f32.mrb[1].mxu0 }
  0xfa   :  { %v721_v42 = vadd.f32 %v720_v40, %v719_v38  ;;  %v755_v43 = vpop.f32.mrb[1].mxu1 }
  0xfb   :  { %v756_v44 = vadd.f32 %v755_v43, %v754_v39 }
  0xfd   :  { %v282_v45 = vadd.f32 %v756_v44, %v721_v42 }
 0x118   :  { %v789_v46 = vpop.f32.mrb[2].mxu0 }
 0x119   :  { %v790_v47 = vpop.f32.mrb[3].mxu0 }
 0x11a   :  { %v791_v48 = vadd.f32 %v790_v47, %v789_v46 }
 0x11c   :  { %v352_v50 = vadd.f32 %v791_v48, %v282_v45 }
 0x11e   :  { %v355_v51 = vmax.f32 %v352_v50, 0.0 }
 0x120   :  { %674 = vmatmul.mubr.msk.f32.vlgmr.msra.gmra.mrb[2].mxu1 %vm365_vm1, %v355_v51 }
 0x121   :  { %676 = vmatpush1.msk.msra.mxu1 %vm369_vm0, %v357_v35  ;;  %517 = vmatprep.mubr.f32.mxu1 %v919_v36 }
 0x122   :  { %678 = vmatprep.subr.msk.mxu1 %vm369_vm0, %v364_v52 }
 0x124   :  { %677 = vmatmul.mubr.msk.f32.vlgmr.msra.gmra.mrb[4].mxu1 %vm365_vm1, %v355_v51 }
 0x125   :  { %679 = vmatpush1.msk.msra.mxu1 %vm369_vm0, %v358_v49  ;;  %588 = vmatprep.mubr.f32.mxu1 %v919_v36 }
 0x128   :  { %680 = vmatmul.mubr.msk.f32.vlgmr.msra.gmra.mrb[6].mxu1 %vm365_vm1, %v355_v51 }
 0x1f3   :  { %v448_v53 = vpop.f32.mrb[2].mxu1 }
 0x1f4   :  { %v681_v54 = vmul.f32 -1.442695, %v448_v53  ;;  %v450_v55 = vpop.f32.mrb[3].mxu1 }
 0x1f5   :  { %v682_v56 = vmul.f32 -1.442695, %v450_v55 }
 0x1f6   :  { %894 = vpow2.f32 %v681_v54 }
 0x1f7   :  { %896 = vpow2.f32 %v682_v56  ;;  %v519_v57 = vpop.f32.mrb[4].mxu1 }
 0x1f8   :  { %v683_v58 = vmul.f32 -1.442695, %v519_v57  ;;  %v521_v59 = vpop.f32.mrb[5].mxu1 }
 0x1f9   :  { %v684_v60 = vmul.f32 -1.442695, %v521_v59 }
 0x1fa   :  { %898 = vpow2.f32 %v683_v58 }
 0x1fb   :  { %900 = vpow2.f32 %v684_v60  ;;  %v590_v61 = vpop.f32.mrb[6].mxu1 }
 0x1fc   :  { %v685_v62 = vmul.f32 -1.442695, %v590_v61  ;;  %v592_v63 = vpop.f32.mrb[7].mxu1 }
 0x1fd   :  { %v686_v0 = vmul.f32 -1.442695, %v592_v63 }
 0x1fe   :  { %902 = vpow2.f32 %v685_v62 }
 0x1ff   :  { %904 = vpow2.f32 %v686_v0 }
 0x200   :  { %v895_v1 = vpop.eup %894 }
 0x201   :  { %v897_v2 = vpop.eup %896  ;;  %v613_v3 = vadd.f32 1.0, %v895_v1 }
 0x202   :  { %v614_v4 = vadd.f32 1.0, %v897_v2 }
 0x203   :  { %906 = vrcp.f32 %v613_v3 }
 0x204   :  { %v899_v5 = vpop.eup %898  ;;  %908 = vrcp.f32 %v614_v4 }
 0x205   :  { %v901_v6 = vpop.eup %900  ;;  %v615_v7 = vadd.f32 1.0, %v899_v5 }
 0x206   :  { %v616_v8 = vadd.f32 1.0, %v901_v6 }
 0x207   :  { %910 = vrcp.f32 %v615_v7 }
 0x208   :  { %v903_v9 = vpop.eup %902  ;;  %912 = vrcp.f32 %v616_v8 }
 0x209   :  { %v905_v10 = vpop.eup %904  ;;  %v617_v11 = vadd.f32 1.0, %v903_v9 }
 0x20a   :  { %v618_v12 = vadd.f32 1.0, %v905_v10 }
 0x20b   :  { %914 = vrcp.f32 %v617_v11 }
 0x20c   :  { %916 = vrcp.f32 %v618_v12 }
 0x20d   :  { %v907_v14 = vpop.eup %906 }
 0x20e   :  { %v909_v15 = vpop.eup %908 }
 0x20f   :  { %v637_v16 = vcombine.low %v907_v14, %v909_v15 }
 0x211   :  { %v911_v17 = vpop.eup %910  ;;  %v645_v21 = vrot.slane %v637_v16, %v1090_v13 }
 0x212   :  { %v913_v18 = vpop.eup %912 }
 0x213   :  { %v638_v19 = vcombine.low %v911_v17, %v913_v18 }
 0x215   :  { %v915_v20 = vpop.eup %914  ;;  %v652_v23 = vrot.slane %v638_v19, %v1090_v13 }
 0x216   :  { %v917_v24 = vpop.eup %916 }
 0x217   :  { %v653_v25 = vcombine.low %v645_v21, %v652_v23  ;;  %v654_v26 = vcombine.low %v915_v20, %v917_v24 }
 0x219   :  { %v664_v27 = vmul.f32 %v653_v25, %v1110_v22  ;;  %v661_v28 = vrot.slane %v654_v26, %v1090_v13 }
 0x21b   :  { %v665_v29 = vmul.f32 %v661_v28, %v1147_v41  ;;  %666 = vst [vmem:[%s1281_s3] sm:$0xff] %v664_v27 }
 0x21d   :  { %667 = vst [vmem:[%s1281_s3 + $0x8] sm:$0xf] %v665_v29 }

</bundles_post_ra>
